<compile_context>
chip_gen: v7x
topology: tpu7x:2x2x1
jax: 0.10.0
libtpu: 0.0.40
codegen_flags: <defaults>
</compile_context>

<pallas_src>
import functools

import jax
import jax.numpy as jnp
from jax.experimental import pallas as pl
from jax.experimental.pallas import tpu as pltpu


def _round_up(n, m):
    return ((n + m - 1) // m) * m


def _center_loss_kernel(x_ref, labels_ref, centers_ref, out_ref, *, total_batch):
    pid = pl.program_id(0)
    tb = x_ref.shape[0]
    num_classes = centers_ref.shape[0]

    # This tile's labels, sliced out of the resident (padded) labels array.
    start = pl.multiple_of(pid * tb, 8)
    lab = labels_ref[pl.ds(start, tb), :]                      # (tb, 1) int32

    # Centers resident in VMEM, used in their native dtype (no per-tile upcast).
    centers = centers_ref[...]                                 # (C, D)
    mm_dtype = centers.dtype if jnp.issubdtype(centers.dtype, jnp.floating) else jnp.float32

    # One-hot selection matrix (tb, C); centers[label] via one MXU matmul.
    # The one-hot is exactly 0/1, so running the matmul in the centers' native
    # (possibly bf16) dtype keeps the selection exact and runs at full MXU rate.
    class_ids = jax.lax.broadcasted_iota(jnp.int32, (tb, num_classes), 1)
    onehot = (lab == class_ids).astype(mm_dtype)               # (tb, C)
    centers_sel = jnp.dot(onehot, centers.astype(mm_dtype),
                          preferred_element_type=jnp.float32)  # (tb, D) f32

    x = x_ref[...].astype(jnp.float32)                         # upcast in-kernel
    diff = x - centers_sel                                     # (tb, D) f32

    def _write_partial(d):
        # Lane-dense full-block store; wrapper reads element [0, 0] of each block.
        out_ref[...] = jnp.broadcast_to(jnp.sum(d * d), out_ref.shape)

    rem = total_batch % tb                                     # static Python int
    if rem != 0:
        last = pl.num_programs(0) - 1

        @pl.when(pid != last)
        def _full_tile():
            _write_partial(diff)

        @pl.when(pid == last)
        def _masked_tile():
            # Mask rows of the last tile that overhang the real batch (block
            # padding may contain garbage, incl. NaN bit patterns, so select
            # before squaring -- not a multiply).
            row = jax.lax.broadcasted_iota(jnp.int32, (tb, 1), 0)
            _write_partial(jnp.where(row < rem, diff, 0.0))
    else:
        _write_partial(diff)


def center_loss(feat, labels, centers, *, block_batch=512):
    """CenterLoss forward: 0.5 * sum_i ||feat_i - centers[labels_i]||^2.

    feat:    (B, ...) float array, flattened to (B, feat_dim) like the torch module.
    labels:  (B,) integer class ids.
    centers: (num_classes, feat_dim).
    """
    B = feat.shape[0]
    feat2d = feat.reshape(B, -1)
    D = feat2d.shape[1]
    C = centers.shape[0]
    if D != centers.shape[1]:
        raise ValueError(
            "Center's dim: {0} should be equal to input feature's dim: {1}".format(
                centers.shape[1], D))

    feat_bytes = jnp.dtype(feat2d.dtype).itemsize
    centers_bytes = jnp.dtype(centers.dtype).itemsize
    centers_resident = C * D * centers_bytes

    # Conservative budget that fits the scoped VMEM we request below on every
    # generation (v5e 16 MiB default / 128 MiB phys, v6e 32/128, v7x 32/64).
    vmem_budget = 24 * 1024 * 1024
    if centers_resident > vmem_budget // 2:
        # TODO(synk): for face-recognition-scale num_classes, switch to a
        # scalar-prefetch label + pipelined DMA gather of center rows (centers in
        # memory_space=pl.ANY) instead of resident centers + one-hot matmul.
        raise ValueError(
            "centers ({} bytes) too large to keep resident in VMEM".format(centers_resident))

    def _tile_bytes(t):
        return (2 * t * D * feat_bytes   # double-buffered feat tiles
                + t * D * 4              # f32 diff working set
                + t * C * 4              # one-hot working set
                + centers_resident)      # resident centers

    tb = min(_round_up(block_batch, 8), _round_up(B, 8))
    while tb > 8 and _tile_bytes(tb) > vmem_budget:
        tb = _round_up(tb // 2, 8)

    num_tiles = pl.cdiv(B, tb)
    b_pad = num_tiles * tb

    # Labels are tiny: pad once to a whole number of tiles and keep them resident
    # in VMEM (padding value is irrelevant -- overhang rows are masked in-kernel).
    labels_flat = labels.reshape(B).astype(jnp.int32)
    if b_pad != B:
        labels_flat = jnp.pad(labels_flat, (0, b_pad - B))
    labels2d = labels_flat.reshape(b_pad, 1)

    vmem_limit = int(min(48 * 1024 * 1024,
                         max(32 * 1024 * 1024, _tile_bytes(tb) * 3 // 2)))

    kernel = functools.partial(_center_loss_kernel, total_batch=B)
    partials = pl.pallas_call(
        kernel,
        out_shape=jax.ShapeDtypeStruct((num_tiles, 8, 128), jnp.float32),
        grid_spec=pltpu.PrefetchScalarGridSpec(
            num_scalar_prefetch=0,
            grid=(num_tiles,),
            in_specs=[
                pl.BlockSpec((tb, D), lambda i: (i, 0)),   # feat tile (native dtype)
                pl.BlockSpec(memory_space=pltpu.VMEM),     # labels, resident in VMEM
                pl.BlockSpec(memory_space=pltpu.VMEM),     # centers, resident in VMEM
            ],
            out_specs=pl.BlockSpec((1, 8, 128), lambda i: (i, 0, 0)),
        ),
        compiler_params=pltpu.CompilerParams(
            dimension_semantics=("parallel",),             # tiles are independent
            vmem_limit_bytes=vmem_limit,
        ),
    )(feat2d, labels2d, centers)

    # Final cross-tile reduce + the 0.5 scale happen once, outside the kernel.
    return 0.5 * jnp.sum(partials[:, 0, 0])


def center_loss_ref(feat, labels, centers):
    """Pure-JAX reference mirroring CenterlossFunction.forward."""
    B = feat.shape[0]
    feat2d = feat.reshape(B, -1).astype(jnp.float32)
    diff = feat2d - centers.astype(jnp.float32)[labels]
    return 0.5 * jnp.sum(diff * diff)


# TODO(synk): only the forward pass is implemented; the custom autograd backward
# (per-class grad_centers scatter/count) is not translated.

if __name__ == "__main__":
    key = jax.random.PRNGKey(0)
    k_feat, k_centers, k_labels = jax.random.split(key, 3)

    batch, num_classes, feat_dim = 20, 4, 32
    feat = jax.random.normal(k_feat, (batch, feat_dim), dtype=jnp.float32)
    # Module parameter: centers ~ randn(num_classes, feat_dim).
    centers = jax.random.normal(k_centers, (num_classes, feat_dim), dtype=jnp.float32)
    labels = jax.random.randint(k_labels, (batch,), 0, num_classes, dtype=jnp.int32)

    # block_batch=8 -> grid of 3 batch tiles; the last tile overhangs the batch,
    # exercising the parallel per-tile partial outputs and the last-tile mask path.
    loss = center_loss(feat, labels, centers, block_batch=8)
    loss = jax.block_until_ready(loss)

    ref = center_loss_ref(feat, labels, centers)
    assert jnp.allclose(loss, ref, rtol=1e-5, atol=1e-5), (loss, ref)

    print("KERNEL_OK")
</pallas_src>

<mosaic_0001>
module attributes {stable_mosaic.version = 11 : i64} {
  func.func @_center_loss_kernel(%arg0: i32, %arg1: memref<8x32xf32, #tpu.memory_space<vmem>>, %arg2: memref<24x1xi32, #tpu.memory_space<vmem>>, %arg3: memref<4x32xf32, #tpu.memory_space<vmem>>, %arg4: memref<1x8x128xf32, #tpu.memory_space<vmem>>) attributes {dimension_semantics = [#tpu.dimension_semantics<parallel>], iteration_bounds = array<i64: 3>, scalar_prefetch = 0 : i64, scratch_operands = 0 : i64, tpu.core_type = #tpu.core_type<tc>, window_params = [{transform_indices = @transform_0, window_bounds = array<i64: 8, 32>}, {pipeline_mode = #tpu.pipeline_mode<synchronous>, transform_indices = @transform_1, window_bounds = array<i64: 24, 1>}, {pipeline_mode = #tpu.pipeline_mode<synchronous>, transform_indices = @transform_2, window_bounds = array<i64: 4, 32>}, {transform_indices = @transform_3, window_bounds = array<i64: 1, 8, 128>}]} {
    %c8_i32 = arith.constant 8 : i32
    %0 = arith.muli %arg0, %c8_i32 : i32
    %1 = tpu.assume_multiple %0, 8 : i32
    %2 = arith.index_cast %1 : i32 to index
    %c0 = arith.constant 0 : index
    %3 = vector.load %arg2[%2, %c0] : memref<24x1xi32, #tpu.memory_space<vmem>>, vector<8x1xi32>
    %c0_0 = arith.constant 0 : index
    %c0_1 = arith.constant 0 : index
    %4 = vector.load %arg3[%c0_0, %c0_1] : memref<4x32xf32, #tpu.memory_space<vmem>>, vector<4x32xf32>
    %5 = tpu.iota {dimensions = array<i32: 1>} : vector<8x4xi32>
    %6 = vector.broadcast %3 : vector<8x1xi32> to vector<8x4xi32>
    %7 = arith.cmpi eq, %6, %5 : vector<8x4xi32>
    %8 = arith.extui %7 : vector<8x4xi1> to vector<8x4xi32>
    %9 = arith.sitofp %8 : vector<8x4xi32> to vector<8x4xf32>
    %cst = arith.constant dense<0.000000e+00> : vector<8x32xf32>
    %10 = tpu.matmul %9, %4, %cst {dimension_numbers = #tpu.dot_dimension_numbers<[1], [0], [0], [1], [0, 0, 1, 1], [], []>} : vector<8x4xf32>, vector<4x32xf32>, vector<8x32xf32> -> vector<8x32xf32>
    %c0_2 = arith.constant 0 : index
    %c0_3 = arith.constant 0 : index
    %11 = vector.load %arg1[%c0_2, %c0_3] : memref<8x32xf32, #tpu.memory_space<vmem>>, vector<8x32xf32>
    %12 = arith.subf %11, %10 : vector<8x32xf32>
    %c2_i32 = arith.constant 2 : i32
    %13 = arith.cmpi ne, %arg0, %c2_i32 : i32
    %14 = arith.extui %13 : i1 to i32
    %c0_i32 = arith.constant 0 : i32
    %15 = arith.cmpi ne, %14, %c0_i32 : i32
    scf.if %15 {
      %19 = arith.mulf %12, %12 : vector<8x32xf32>
      %20 = vector.shape_cast %19 : vector<8x32xf32> to vector<1x8x32xf32>
      %cst_6 = arith.constant dense<0.000000e+00> : vector<1xf32>
      %21 = vector.multi_reduction <add>, %20, %cst_6 [1, 2] : vector<1x8x32xf32> to vector<1xf32>
      %22 = vector.shape_cast %21 : vector<1xf32> to vector<1x1x1xf32>
      %23 = vector.extract %22[0, 0, 0] : f32 from vector<1x1x1xf32>
      %24 = vector.broadcast %23 : f32 to vector<1x8x128xf32>
      %c0_7 = arith.constant 0 : index
      %c0_8 = arith.constant 0 : index
      %c0_9 = arith.constant 0 : index
      %25 = vector.load %arg4[%c0_7, %c0_8, %c0_9] : memref<1x8x128xf32, #tpu.memory_space<vmem>>, vector<1x8x128xf32>
      tpu.vector_store %arg4[%c0_7, %c0_8, %c0_9], %24 {strides = array<i32>} : memref<1x8x128xf32, #tpu.memory_space<vmem>>, vector<1x8x128xf32>,
    } else {
    }
    %c2_i32_4 = arith.constant 2 : i32
    %16 = arith.cmpi eq, %arg0, %c2_i32_4 : i32
    %17 = arith.extui %16 : i1 to i32
    %c0_i32_5 = arith.constant 0 : i32
    %18 = arith.cmpi ne, %17, %c0_i32_5 : i32
    scf.if %18 {
      %19 = tpu.iota {dimensions = array<i32: 0>} : vector<8x1xi32>
      %c4_i32 = arith.constant 4 : i32
      %20 = vector.broadcast %c4_i32 : i32 to vector<8x1xi32>
      %21 = arith.cmpi slt, %19, %20 : vector<8x1xi32>
      %cst_6 = arith.constant 0.000000e+00 : f32
      %22 = vector.shape_cast %21 : vector<8x1xi1> to vector<8x1xi1>
      %23 = vector.broadcast %22 : vector<8x1xi1> to vector<8x32xi1>
      %24 = vector.broadcast %cst_6 : f32 to vector<8x32xf32>
      %25 = arith.select %23, %12, %24 : vector<8x32xi1>, vector<8x32xf32>
      %26 = arith.mulf %25, %25 : vector<8x32xf32>
      %27 = vector.shape_cast %26 : vector<8x32xf32> to vector<1x8x32xf32>
      %cst_7 = arith.constant dense<0.000000e+00> : vector<1xf32>
      %28 = vector.multi_reduction <add>, %27, %cst_7 [1, 2] : vector<1x8x32xf32> to vector<1xf32>
      %29 = vector.shape_cast %28 : vector<1xf32> to vector<1x1x1xf32>
      %30 = vector.extract %29[0, 0, 0] : f32 from vector<1x1x1xf32>
      %31 = vector.broadcast %30 : f32 to vector<1x8x128xf32>
      %c0_8 = arith.constant 0 : index
      %c0_9 = arith.constant 0 : index
      %c0_10 = arith.constant 0 : index
      %32 = vector.load %arg4[%c0_8, %c0_9, %c0_10] : memref<1x8x128xf32, #tpu.memory_space<vmem>>, vector<1x8x128xf32>
      tpu.vector_store %arg4[%c0_8, %c0_9, %c0_10], %31 {strides = array<i32>} : memref<1x8x128xf32, #tpu.memory_space<vmem>>, vector<1x8x128xf32>,
    } else {
    }
    return
  }
  func.func @transform_0(%arg0: i32) -> (i32, i32) {
    %c0_i32 = arith.constant 0 : i32
    %c0_i32_0 = arith.constant 0 : i32
    return %arg0, %c0_i32 : i32, i32
  }
  func.func @transform_1(%arg0: i32) -> (i32, i32) {
    %c0_i32 = arith.constant 0 : i32
    %c0_i32_0 = arith.constant 0 : i32
    %c0_i32_1 = arith.constant 0 : i32
    return %c0_i32, %c0_i32_0 : i32, i32
  }
  func.func @transform_2(%arg0: i32) -> (i32, i32) {
    %c0_i32 = arith.constant 0 : i32
    %c0_i32_0 = arith.constant 0 : i32
    %c0_i32_1 = arith.constant 0 : i32
    return %c0_i32, %c0_i32_0 : i32, i32
  }
  func.func @transform_3(%arg0: i32) -> (i32, i32, i32) {
    %c0_i32 = arith.constant 0 : i32
    %c0_i32_0 = arith.constant 0 : i32
    %c0_i32_1 = arith.constant 0 : i32
    return %arg0, %c0_i32, %c0_i32_0 : i32, i32, i32
  }
}

</mosaic_0001>

<bundles_post_ra>
// kernel: tpu_custom_call.1
= control target key start
LH: loop header
LB: loop body
LE: loop exit
PB: predicated region body
PF: predicated region fallthrough
CT: control target
= control target key end

     0   :  { %8 = vsyncpa [#allocation3], 0  ;;  %s648_s0 = inlined_call_operand.vmem [shape: f32[20,32], index: 0, kind: input, shape index: {}]   ;;  %s649_s1 = inlined_call_operand.vmem [shape: s32[24,1], index: 1, kind: input, shape index: {}]   ;;  %s650_s2 = inlined_call_operand.vmem [shape: f32[4,32], index: 2, kind: input, shape index: {}]   ;;  %s651_s3 = inlined_call_operand.hbm [shape: f32[3,8,128], index: 3, kind: output, shape index: {}]  }
   0x1   :  { %10 = vsyncpa [#allocation3 + $0x1], 0  ;;  %s533_s12 = smov 0   ;;  %s535_s13 = smov 0  }
   0x2   :  { %s537_s14 = smov 0   ;;  %s539_s15 = smov 0  }
   0x3 LB: > { %s554_s16 = sadd.s32 4294967295, %s507_s15   ;;  %s375_s17 = sadd.s32 4294967294, %s507_s15   ;;  %s507_s15 = sphi %s539_s15, %s657_s15   ;;  %s503_s14 = sphi %s537_s14, %s656_s14   ;;  %s499_s13 = sphi %s535_s13, %s655_s13   ;;  %s495_s12 = sphi %s533_s12, %s654_s12  }
   0x4   : > { %s558_s18 = sadd.s32 1, %s507_s15   ;;  %s91_s19 = sadd.s32 1, %s503_s14 }
   0x5   : > { %s88_s20 = ssub.s32 %s507_s15, %s558_s18  ;;  %p101_p0 = scmp.ne.s32.totalorder %s503_s14, %s499_s13 }
   0x6   : > { %p89_p1 = scmp.eq.s32.totalorder %s88_s20, 0  ;;  %p102_p2 = scmp.eq.s32.totalorder %s554_s16, 2 }
   0x7   : > { %p107_p3 = scmp.ne.s32.totalorder %s499_s13, %s495_s12  ;;  %p108_p4 = scmp.eq.s32.totalorder %s375_s17, 2 }
   0x8   : > { %s569_s21 = scalar_select %p89_p1, %s503_s14, %s91_s19  }
   0x9   : > { %p573_p5 = por %p102_p2, %p101_p0  ;;  %p577_p6 = por %p108_p4, %p107_p3 }
   0xa   : > { %p378_p7 = scmp.ge.s32.totalorder %s507_s15, 1  ;;  %p139_p8 = scmp.lt.s32.totalorder %s507_s15, 4 }
   0xc   : > { %p140_p9 = pnand %p378_p7, %p139_p8 }
   0xd   : > { %s381_s24 = sshll.u32 (!%p140_p9), %s554_s16, 3  ;;  %v509_v0 = vmov (!%p140_p9), 0   ;;  %v510_v1 = vmov (!%p140_p9), 0.0   ;;  %v169_v3 = vld [vmem:[%s650_s2] sm:$0xf] (!%p140_p9)  ;;  %vm182_vm0 = vcmask (!%p140_p9), 1043456   ;;  %v170_v4 = vlaneseq (!%p140_p9) }
   0xe   : > { %143 = sbr.rel (%p140_p9) target bundleno = 807 (0x327), region = 32  ;;  %444 = vset.pattern.permute.xlu0 (!%p140_p9), %v509_v0  ;;  %s167_s27 = scalar_lea.vmem (!%p140_p9), %s649_s1, %s381_s24  ;;  %393 = vmatprep.subr.mxu0 (!%p140_p9), %v510_v1  ;;  %vm511_vm1 = vmmov (!%p140_p9), 0   ;;  %vm178_vm2 = vcmask (!%p140_p9), 31744  }
   0xf   : > { %v168_v2 = vld [vmem:[%s167_s27] sm:$0xff] (!%p140_p9)  ;;  %s159_s30 = sand.u32 (!%p140_p9), 1, %s499_s13   ;;  %394 = vmatpush3.msk.msra.mxu0 (!%p140_p9), %vm182_vm0, %v169_v3  ;;  %395 = vmatprep.mubr.msk.f32.mxu0 (!%p140_p9), %vm511_vm1, %v510_v1  ;;  %v171_v5 = vand.u32 (!%p140_p9), 127, %v170_v4  ;;  %p162_p10 = scmp.lt.s32.totalorder (!%p140_p9), %s554_s16, 2 }
  0x10   : > { %173 = vperm.xlu0 (!%p140_p9), %444, %v168_v2   ;;  %s379_s4 = sshll.u32 (!%p140_p9), %s159_s30, 3 }
  0x11   : > { %s598_s10 = scalar_lea.vmem (!%p140_p9), [#allocation2], %s379_s4 }
  0x15   : > { %s163_s5 = scalar_select %p162_p10, %s554_s16, 2 }
  0x16   : > { %vm263_vm4 = vcmask (!%p102_p2), 261120  }
  0x17   : > { %s380_s6 = sshll.u32 %s163_s5, 3 }
  0x18   : > { %s165_s9 = scalar_lea.vmem %s648_s0, %s380_s6 }
  0x19   : > { %v256_v8 = vld [vmem:[%s165_s9] sm:$0xff] }
  0x8f   : > { %v174_v6 = vpop.permute.xlu0 %173 }
  0x90   : > { %vm175_vm3 = vcmp.eq.s32.totalorder %v174_v6, %v171_v5 }
  0x91   : > { %v382_v7 = vsel %vm175_vm3, 1.0, %v510_v1 }
  0x92   : > { %396 = vmatmul.mubr.msk.f32.vlgmr.msra.gmra.mrb[0].mxu0 %vm178_vm2, %v382_v7 }
 0x160   : > { %261 = sbr.rel (%p102_p2) target bundleno = 569 (0x239), region = 36 }
 0x165   : > { %v252_v9 = vpop.f32.mrb[0].mxu0 }
 0x166   : > { %v257_v10 = vsub.f32 %v256_v8, %v252_v9  ;;  %v397_v11 = vpop.f32.mrb[1].mxu0 }
 0x168   : > { %v262_v12 = vmul.f32 %v257_v10, %v257_v10 }
 0x16a   : > { %v264_v13 = vsel %vm263_vm4, %v262_v12, 0.0 }
 0x16b   : > { %265 = vadd.xlane.f32.xlu0 %v264_v13 }
 0x1f8   : > { %v266_v14 = vpop.xlane.xlu0 %265 }
 0x1f9   : > { %v267_v15 = vrot.slane %v266_v14, 4 }
 0x1fb   : > { %v268_v16 = vadd.f32 %v267_v15, %v266_v14 }
 0x1fd   : > { %v269_v17 = vrot.slane %v268_v16, 2 }
 0x1ff   : > { %v270_v18 = vadd.f32 %v269_v17, %v268_v16 }
 0x201   : > { %v271_v19 = vrot.slane %v270_v18, 1 }
 0x203   : > { %v272_v20 = vadd.f32 %v271_v19, %v270_v18 }
 0x205   : > { %398 = vpush %v272_v20 }
 0x236   : > { %s399_s11 = spop %398 }
 0x237   : > { %v274_v21 = vstv %s399_s11 }
 0x238   : > { %275 = vst [vmem:[%s598_s10] sm:$0xff] %v274_v21 }
 0x239 PF: > { %p386_p11 = scmp.ne.s32.totalorder %s554_s16, 2 }
 0x23a   : > { %v281_v22 = vshrl.u32 (!%p386_p11), %v170_v4, 7  ;;  %vm287_vm6 = vcmask (!%p386_p11), 261120  }
 0x23b   : > { %279 = sbr.rel (%p386_p11) target bundleno = 783 (0x30f), region = 40 }
 0x23c   : > { %vm282_vm5 = vcmp.lt.s32.totalorder (!%p386_p11), %v281_v22, 4 }
 0x23d   : > { %v285_v23 = vsel (!%p386_p11), %vm282_vm5, %v257_v10, 0.0 }
 0x23e   : > { %v286_v24 = vmul.f32 (!%p386_p11), %v285_v23, %v285_v23 }
 0x240   : > { %v288_v25 = vsel (!%p386_p11), %vm287_vm6, %v286_v24, 0.0 }
 0x241   : > { %289 = vadd.xlane.f32.xlu0 (!%p386_p11), %v288_v25 }
 0x2ce   : > { %v290_v26 = vpop.xlane.xlu0 %289 }
 0x2cf   : > { %v291_v27 = vrot.slane %v290_v26, 4 }
 0x2d1   : > { %v292_v28 = vadd.f32 %v291_v27, %v290_v26 }
 0x2d3   : > { %v293_v29 = vrot.slane %v292_v28, 2 }
 0x2d5   : > { %v294_v30 = vadd.f32 %v293_v29, %v292_v28 }
 0x2d7   : > { %v295_v31 = vrot.slane %v294_v30, 1 }
 0x2d9   : > { %v296_v32 = vadd.f32 %v295_v31, %v294_v30 }
 0x2db   : > { %400 = vpush %v296_v32 }
 0x30c   : > { %s401_s17 = spop %400 }
 0x30d   : > { %v298_v33 = vstv %s401_s17 }
 0x30e   : > { %299 = vst [vmem:[%s598_s10] sm:$0xff] %v298_v33 }
 0x30f PF: > { %s388_s19 = sshll.u32 %s554_s16, 7  ;;  %s314_s26 = sshll.u32 %s598_s10, 4  ;;  %s315_s26 = int_to_ptr.vmem [resolvable:$true] %s314_s26 }
 0x310   : > { %s609_s25 = scalar_lea.hbm %s651_s3, %s388_s19  ;;  %s301_s27 = scalar_lea.sflag [#allocation3], %s159_s30 }
 0x311   : > { %s445_s28 = scalar_lea.vmem %s315_s26, 128  ;;  %s512_s29 = smov [#allocation2]  }
 0x312   : > { %p446_p12 = scmp.ne.s32.totalorder %s315_s26, %s445_s28  ;;  %s449_s4 = sshll.u32 %s512_s29, 4  ;;  %s450_s4 = int_to_ptr.vmem [resolvable:$false] %s449_s4 }
 0x313   : > { %s451_s5 = scalar_lea.vmem %s450_s4, 256  ;;  %p452_p1 = scmp.lt.s32.totalorder %s315_s26, %s450_s4 }
 0x314   : > { %p447_p13 = pnand %p446_p12, %p573_p5  ;;  %p453_p2 = scmp.lt.s32.totalorder %s451_s5, %s445_s28 }
 0x316   : > { %p448_p0 = pneg %p447_p13  ;;  %p454_p3 = por %p453_p2, %p452_p1 }
 0x318   : > { %p455_p4 = pnand %p454_p3, %p448_p0 }
 0x31a   : > { %458 = shalt.err (!%p455_p4)
}
 0x31b   : > { %s459_s16 = scalar_lea.hbm %s609_s25, 128  ;;  %s463_s7 = scalar_lea.hbm %s651_s3, 384 }
 0x31c   : > { %p460_p7 = scmp.ne.s32.totalorder %s609_s25, %s459_s16  ;;  %p464_p10 = scmp.lt.u32.totalorder %s609_s25, %s651_s3 }
 0x31d   : > { %p465_p11 = scmp.lt.u32.totalorder %s463_s7, %s459_s16  ;;  %p467_p13 = scmp.lt.u32.totalorder %s459_s16, %s609_s25 }
 0x31e   : > { %p461_p8 = pnand %p460_p7, %p573_p5 }
 0x31f   : > { %p466_p12 = por %p465_p11, %p464_p10 }
 0x320   : > { %p462_p9 = pneg %p461_p8 }
 0x321   : > { %p468_p0 = por %p467_p13, %p466_p12 }
 0x323   : > { %p469_p1 = pnand %p468_p0, %p462_p9 }
 0x325   : > { %472 = shalt.err (!%p469_p1)
}
 0x326   : > { %402 = dma.vmem_to_hbm [thread:$0]  (%p573_p5), %s315_s26, 128, %s609_s25, %s301_s27  }
 0x327 PF: > { %p408_p2 = scmp.ge.s32.totalorder %s507_s15, 2  ;;  %s326_s10 = sand.u32 1, %s495_s12  }
 0x328   : > { %s327_s11 = scalar_lea.sflag [#allocation3], %s326_s10 }
 0x329   : > { %p405_p3 = pnand %p408_p2, %p577_p6 }
 0x32b   : > { %490 = dma.done.wait (!%p405_p3), %s327_s11, 128  }
 0x32c   : > { %492 = vsyncadd (!%p405_p3), %s327_s11, 4294967168  ;;  %p13_p4 = scmp.ge.s32.totalorder %s558_s18, 5   ;;  %s654_s12 = smov %s499_s13 }
 0x32d   : > { %s655_s13 = smov %s503_s14  ;;  %s656_s14 = smov %s569_s21 }
 0x32e   : > { %s657_s15 = smov %s558_s18  ;;  %15 = sbr.rel (!%p13_p4) target bundleno = 3 (0x3), region = 76 }
 0x335   :  { %332 = vsyncpa [#allocation3], 1 }
 0x336   :  { %334 = vsyncpa [#allocation3 + $0x1], 1 }

</bundles_post_ra>
